<compile_context>
chip_gen: v6e
topology: v6e:2x2x1
jax: 0.10.0
libtpu: 0.0.40
codegen_flags: <defaults>
</compile_context>

<pallas_src>
import jax
import jax.numpy as jnp
from jax.experimental import pallas as pl
from jax.experimental.pallas import tpu as pltpu

IN_FEATURES = 100
OUT_FEATURES = 784


def _round_up(x, m):
    return (x + m - 1) // m * m


def _choose_tile(batch, tm_max=512):
    """Pick the batch tile: big tiles for HBM efficiency, >=2 tiles for v7x."""
    tm = min(tm_max, _round_up(batch, 8))
    # Ensure at least 2 batch tiles so a 2-TensorCore chip (v7x) shards the
    # 'parallel' axis across both cores; harmless on 1-TC v5e/v6e.
    if pl.cdiv(batch, tm) < 2 and batch > 8:
        tm = _round_up(pl.cdiv(batch, 2), 8)
    return tm


def _generator_kernel(z_ref, w_ref, b_ref, o_ref):
    # z_ref: (TM, 100) f32   w_ref: (100, 784) bf16
    # b_ref: (1, 784)  f32   o_ref: (TM, 784)  bf16
    z = z_ref[...].astype(jnp.bfloat16)                 # VPU cast, no HBM pass
    y = jnp.dot(z, w_ref[...], preferred_element_type=jnp.float32)
    y = y + b_ref[...]                                  # bias broadcast (f32, VPU)
    # sigmoid(y) = 0.5 + 0.5 * tanh(0.5 * y)  -> one EUP op per vreg.
    o_ref[...] = (0.5 + 0.5 * jnp.tanh(0.5 * y)).astype(o_ref.dtype)


def generator_forward(z, w_k, b_k, *, tm=512, out_dtype=jnp.bfloat16):
    """z: [B, 100] f32; w_k: [100, 784] bf16 (pre-packed); b_k: [1, 784] f32."""
    batch = z.shape[0]
    tm = _choose_tile(batch, tm)
    grid = pl.cdiv(batch, tm)

    cost = pl.CostEstimate(
        flops=2 * batch * IN_FEATURES * OUT_FEATURES,
        transcendentals=batch * OUT_FEATURES,
        bytes_accessed=(z.size * 4 + w_k.size * 2 + b_k.size * 4
                        + batch * OUT_FEATURES * jnp.dtype(out_dtype).itemsize),
    )

    return pl.pallas_call(
        _generator_kernel,
        out_shape=jax.ShapeDtypeStruct((batch, OUT_FEATURES), out_dtype),
        grid_spec=pltpu.PrefetchScalarGridSpec(
            num_scalar_prefetch=0,
            grid=(grid,),
            in_specs=[
                pl.BlockSpec((tm, IN_FEATURES), lambda i: (i, 0)),    # z tile
                pl.BlockSpec((IN_FEATURES, OUT_FEATURES), lambda i: (0, 0)),  # weight
                pl.BlockSpec((1, OUT_FEATURES), lambda i: (0, 0)),    # bias
            ],
            out_specs=pl.BlockSpec((tm, OUT_FEATURES), lambda i: (i, 0)),
        ),
        compiler_params=pltpu.CompilerParams(
            dimension_semantics=("parallel",),   # independent batch tiles
        ),
        cost_estimate=cost,
    )(z, w_k, b_k)


def prepare_params(weight, bias):
    """One-time packing of PyTorch nn.Linear params for the kernel.

    weight: [784, 100] (PyTorch [out, in] layout), bias: [784].
    Returns (w_k [100, 784] bf16, b_k [1, 784] f32).
    """
    w_k = jnp.asarray(weight, jnp.float32).T.astype(jnp.bfloat16)
    b_k = jnp.asarray(bias, jnp.float32).reshape(1, OUT_FEATURES)
    return w_k, b_k


def init_params(key):
    """Deterministic init mirroring nn.Linear's default: U(-1/sqrt(fan_in), ...)."""
    kw, kb = jax.random.split(key)
    bound = 1.0 / jnp.sqrt(jnp.float32(IN_FEATURES))
    weight = jax.random.uniform(kw, (OUT_FEATURES, IN_FEATURES), jnp.float32,
                                -bound, bound)
    bias = jax.random.uniform(kb, (OUT_FEATURES,), jnp.float32, -bound, bound)
    return weight, bias


if __name__ == "__main__":
    key = jax.random.PRNGKey(0)
    k_param, k_z = jax.random.split(key)

    weight, bias = init_params(k_param)          # PyTorch-layout f32 params
    w_k, b_k = prepare_params(weight, bias)      # packed once, reused per call

    batch = 8
    z = jax.random.normal(k_z, (batch, IN_FEATURES), dtype=jnp.float32)

    fwd = jax.jit(generator_forward)
    out = fwd(z, w_k, b_k)
    out = jax.block_until_ready(out)

    # Plain-JAX f32 reference of the same math (PyTorch forward semantics).
    # Tolerance covers bf16 matmul operands + bf16 output storage (~4e-3 abs
    # worst case on values in [0, 1]).
    ref = jax.nn.sigmoid(z @ weight.T + bias[None, :])
    assert out.shape == (batch, OUT_FEATURES)
    assert jnp.allclose(out.astype(jnp.float32), ref, atol=1e-2, rtol=1e-2)

    print("KERNEL_OK")
</pallas_src>

<mosaic_0001>
module attributes {stable_mosaic.version = 11 : i64} {
  func.func @_generator_kernel(%arg0: i32, %arg1: memref<8x100xf32, #tpu.memory_space<vmem>>, %arg2: memref<100x784xbf16, #tpu.memory_space<vmem>>, %arg3: memref<1x784xf32, #tpu.memory_space<vmem>>, %arg4: memref<8x784xbf16, #tpu.memory_space<vmem>>) attributes {dimension_semantics = [#tpu.dimension_semantics<parallel>], iteration_bounds = array<i64: 1>, scalar_prefetch = 0 : i64, scratch_operands = 0 : i64, tpu.core_type = #tpu.core_type<tc>, window_params = [{transform_indices = @transform_0, window_bounds = array<i64: 8, 100>}, {pipeline_mode = #tpu.pipeline_mode<synchronous>, transform_indices = @transform_1, window_bounds = array<i64: 100, 784>}, {pipeline_mode = #tpu.pipeline_mode<synchronous>, transform_indices = @transform_2, window_bounds = array<i64: 1, 784>}, {transform_indices = @transform_3, window_bounds = array<i64: 8, 784>}]} {
    %c0 = arith.constant 0 : index
    %c0_0 = arith.constant 0 : index
    %0 = vector.load %arg1[%c0, %c0_0] : memref<8x100xf32, #tpu.memory_space<vmem>>, vector<8x100xf32>
    %1 = arith.truncf %0 : vector<8x100xf32> to vector<8x100xbf16>
    %c0_1 = arith.constant 0 : index
    %c0_2 = arith.constant 0 : index
    %2 = vector.load %arg2[%c0_1, %c0_2] : memref<100x784xbf16, #tpu.memory_space<vmem>>, vector<100x784xbf16>
    %cst = arith.constant dense<0.000000e+00> : vector<8x784xf32>
    %3 = tpu.matmul %1, %2, %cst {dimension_numbers = #tpu.dot_dimension_numbers<[1], [0], [0], [1], [0, 0, 1, 1], [], []>} : vector<8x100xbf16>, vector<100x784xbf16>, vector<8x784xf32> -> vector<8x784xf32>
    %c0_3 = arith.constant 0 : index
    %c0_4 = arith.constant 0 : index
    %4 = vector.load %arg3[%c0_3, %c0_4] : memref<1x784xf32, #tpu.memory_space<vmem>>, vector<1x784xf32>
    %5 = vector.broadcast %4 : vector<1x784xf32> to vector<8x784xf32>
    %6 = arith.addf %3, %5 : vector<8x784xf32>
    %cst_5 = arith.constant 5.000000e-01 : f32
    %7 = vector.broadcast %cst_5 : f32 to vector<8x784xf32>
    %8 = arith.mulf %7, %6 : vector<8x784xf32>
    %9 = math.tanh %8 : vector<8x784xf32>
    %cst_6 = arith.constant 5.000000e-01 : f32
    %10 = vector.broadcast %cst_6 : f32 to vector<8x784xf32>
    %11 = arith.mulf %10, %9 : vector<8x784xf32>
    %cst_7 = arith.constant 5.000000e-01 : f32
    %12 = vector.broadcast %cst_7 : f32 to vector<8x784xf32>
    %13 = arith.addf %12, %11 : vector<8x784xf32>
    %14 = arith.truncf %13 : vector<8x784xf32> to vector<8x784xbf16>
    %c0_8 = arith.constant 0 : index
    %c0_9 = arith.constant 0 : index
    %15 = vector.load %arg4[%c0_8, %c0_9] : memref<8x784xbf16, #tpu.memory_space<vmem>>, vector<8x784xbf16>
    tpu.vector_store %arg4[%c0_8, %c0_9], %14 {strides = array<i32>} : memref<8x784xbf16, #tpu.memory_space<vmem>>, vector<8x784xbf16>,
    return
  }
  func.func @transform_0(%arg0: i32) -> (i32, i32) {
    %c0_i32 = arith.constant 0 : i32
    %c0_i32_0 = arith.constant 0 : i32
    return %arg0, %c0_i32 : i32, i32
  }
  func.func @transform_1(%arg0: i32) -> (i32, i32) {
    %c0_i32 = arith.constant 0 : i32
    %c0_i32_0 = arith.constant 0 : i32
    %c0_i32_1 = arith.constant 0 : i32
    return %c0_i32, %c0_i32_0 : i32, i32
  }
  func.func @transform_2(%arg0: i32) -> (i32, i32) {
    %c0_i32 = arith.constant 0 : i32
    %c0_i32_0 = arith.constant 0 : i32
    %c0_i32_1 = arith.constant 0 : i32
    return %c0_i32, %c0_i32_0 : i32, i32
  }
  func.func @transform_3(%arg0: i32) -> (i32, i32) {
    %c0_i32 = arith.constant 0 : i32
    %c0_i32_0 = arith.constant 0 : i32
    return %arg0, %c0_i32 : i32, i32
  }
}

</mosaic_0001>

<bundles_post_ra>
// kernel: generator_forward.1
= control target key start
LH: loop header
LB: loop body
LE: loop exit
PB: predicated region body
PF: predicated region fallthrough
CT: control target
= control target key end

     0   :  { %8 = vsyncpa [#allocation3], 0  ;;  %s966_s0 = inlined_call_operand.hbm [shape: f32[8,100], index: 0, kind: input, shape index: {}]   ;;  %s967_s1 = inlined_call_operand.hbm [shape: bf16[100,784], index: 1, kind: input, shape index: {}]   ;;  %s968_s2 = inlined_call_operand.hbm [shape: f32[1,784], index: 2, kind: input, shape index: {}]   ;;  %s969_s3 = inlined_call_operand.hbm [shape: bf16[8,784], index: 3, kind: output, shape index: {}]  }
   0x1   :  { %9 = vsyncpa [#allocation6], 0 }
   0x2   :  { %10 = vsyncpa [#allocation4], 0  ;;  %s911_s12 = smov [#allocation5]  }
   0x3   :  { %s26_s13 = sshll.u32 %s911_s12, 4  ;;  %s27_s13 = int_to_ptr.vmem [resolvable:$true] %s26_s13 }
   0x4   :  { %s833_s14 = scalar_lea.vmem %s27_s13, 5824  ;;  %p838_p1 = scmp.lt.s32.totalorder %s27_s13, %s27_s13 }
   0x5   :  { %p834_p0 = scmp.ne.s32.totalorder %s27_s13, %s833_s14  ;;  %p839_p2 = scmp.lt.s32.totalorder %s833_s14, %s833_s14 }
   0x7   :  { %p840_p3 = por %p839_p2, %p838_p1 }
   0x9   :  { %p841_p4 = pnand %p840_p3, %p834_p0 }
   0xb   :  { %844 = shalt.err (!%p841_p4)
}
   0xc   :  { %s912_s15 = smov 448   ;;  %s913_s16 = smov 28  }
   0xd   :  { %32 = dma.hbm_to_vmem [thread:$0]  %s967_s1, 5824, %s27_s13, [#allocation6], %s912_s15, %s912_s15, %s913_s16  }
   0xe   :  { %s914_s19 = smov [#allocation2]   ;;  %s915_s21 = smov [#allocation7]  }
   0xf   :  { %s17_s20 = sshll.u32 %s914_s19, 4  ;;  %s39_s22 = sshll.u32 %s915_s21, 4  ;;  %s18_s20 = int_to_ptr.vmem [resolvable:$true] %s17_s20  ;;  %s40_s22 = int_to_ptr.vmem [resolvable:$true] %s39_s22 }
  0x10   :  { %s853_s23 = scalar_lea.vmem %s18_s20, 128  ;;  %p858_p6 = scmp.lt.s32.totalorder %s18_s20, %s18_s20 }
  0x11   :  { %p854_p5 = scmp.ne.s32.totalorder %s18_s20, %s853_s23  ;;  %p859_p7 = scmp.lt.s32.totalorder %s853_s23, %s853_s23 }
  0x13   :  { %p860_p8 = por %p859_p7, %p858_p6 }
  0x15   :  { %p861_p9 = pnand %p860_p8, %p854_p5 }
  0x17   :  { %864 = shalt.err (!%p861_p9)
}
  0x18   :  { %20 = dma.hbm_to_vmem [thread:$0]  %s966_s0, 128, %s18_s20, [#allocation3]  }
  0x19   :  { %s873_s26 = scalar_lea.vmem %s40_s22, 112  ;;  %s877_s1 = scalar_lea.vmem %s40_s22, 128 }
  0x1a   :  { %p874_p10 = scmp.ne.s32.totalorder %s40_s22, %s873_s26  ;;  %p878_p11 = scmp.lt.s32.totalorder %s40_s22, %s40_s22 }
  0x1b   :  { %p879_p12 = scmp.lt.s32.totalorder %s877_s1, %s873_s26 }
  0x1d   :  { %p880_p13 = por %p879_p12, %p878_p11 }
  0x1f   :  { %p881_p0 = pnand %p880_p13, %p874_p10 }
  0x21   :  { %884 = shalt.err (!%p881_p0)
}
  0x22   :  { %42 = dma.hbm_to_vmem [thread:$0]  %s968_s2, 112, %s40_s22, [#allocation6]  }
  0x23   :  { %905 = dma.done.wait [#allocation3], 128  }
  0x24   :  { %906 = vsyncadd [#allocation3], 4294967168 }
  0x25   :  { %907 = dma.done.wait [#allocation6], 5936  }
  0x26   :  { %908 = vsyncadd [#allocation6], 4294961360  ;;  %v916_v0 = vmov 0   ;;  %v103_v1 = vld [vmem:[#allocation5 + $0x150] sm:$0x33]  ;;  %vm382_vm0 = vcmask 1041408   ;;  %v109_v60 = vlaneseq }
  0x27   :  { %436 = vmatprep.mubr.bf16.mxu0 %v916_v0  ;;  %477 = vmatprep.mubr.bf16.mxu1 %v916_v0  ;;  %v104_v2 = vld [vmem:[#allocation5 + $0x158] sm:$0x33]  ;;  %v688_v3 = vcombine.high %v103_v1, %v103_v1  ;;  %v687_v5 = vcombine.low %v103_v1, %v103_v1  ;;  %v750_v8 = vld [vmem:[#allocation5 + $0x124] ss:$28 sps:$4 sm:$0xff]   ;;  %v756_v14 = vld [vmem:[#allocation5 + $0xec] ss:$28 sps:$4 sm:$0xff]  }
  0x28   :  { %v690_v4 = vcombine.high %v104_v2, %v104_v2  ;;  %v689_v6 = vcombine.low %v104_v2, %v104_v2  ;;  %v748_v7 = vld [vmem:[#allocation5 + $0x11c] ss:$28 sps:$4 sm:$0xff]   ;;  %v754_v13 = vld [vmem:[#allocation5 + $0xe4] ss:$28 sps:$4 sm:$0xff]   ;;  %v760_v17 = vld [vmem:[#allocation5 + $0xac] ss:$28 sps:$4 sm:$0xff]  }
  0x29   :  { %694 = vmatprep.subr.msk.bf16.mxu0 %vm382_vm0, %v688_v3  ;;  %v384_v9 = vsel %vm382_vm0, %v687_v5, 0  ;;  %v752_v11 = vld [vmem:[#allocation5 + $0x118] ss:$28 sps:$4 sm:$0xff]   ;;  %v753_v12 = vld [vmem:[#allocation5 + $0x120] ss:$28 sps:$4 sm:$0xff]   ;;  %vm378_vm1 = vcmask 818176  }
  0x2a   :  { %696 = vmatprep.subr.msk.bf16.mxu1 %vm382_vm0, %v690_v4  ;;  %v390_v10 = vsel %vm382_vm0, %v689_v6, 0  ;;  %407 = vmatpush1.bf16.msra.mxu0 %v384_v9  ;;  %v758_v15 = vld [vmem:[#allocation5 + $0xe0] ss:$28 sps:$4 sm:$0xff]   ;;  %v759_v16 = vld [vmem:[#allocation5 + $0xe8] ss:$28 sps:$4 sm:$0xff]   ;;  %v917_v40 = vmov 0.0  }
  0x2b   :  { %448 = vmatpush1.bf16.msra.mxu1 %v390_v10  ;;  %408 = vmatprep.subr.bf16.mxu0 %v748_v7  ;;  %v762_v18 = vld [vmem:[#allocation5 + $0xb4] ss:$28 sps:$4 sm:$0xff]   ;;  %v764_v19 = vld [vmem:[#allocation5 + $0xa8] ss:$28 sps:$4 sm:$0xff]   ;;  %v768_v22 = vld [vmem:[#allocation5 + $0x7c] ss:$28 sps:$4 sm:$0xff]  }
  0x2c   :  { %449 = vmatprep.subr.bf16.mxu1 %v750_v8  ;;  %v765_v20 = vld [vmem:[#allocation5 + $0xb0] ss:$28 sps:$4 sm:$0xff]   ;;  %v771_v24 = vld [vmem:[#allocation5 + $0x78] ss:$28 sps:$4 sm:$0xff]   ;;  %v774_v26 = vld [vmem:[#allocation5 + $0x44] ss:$28 sps:$4 sm:$0xff]  }
  0x2d   :  { %v766_v21 = vld [vmem:[#allocation5 + $0x74] ss:$28 sps:$4 sm:$0xff]   ;;  %v772_v25 = vld [vmem:[#allocation5 + $0x3c] ss:$28 sps:$4 sm:$0xff]   ;;  %v778_v29 = vld [vmem:[#allocation5 + $0x4] ss:$28 sps:$4 sm:$0xff]  }
  0x2e   :  { %409 = vmatpush1.bf16.msra.mxu0 %v752_v11  ;;  %v770_v23 = vld [vmem:[#allocation5 + $0x70] ss:$28 sps:$4 sm:$0xff]   ;;  %v776_v27 = vld [vmem:[#allocation5 + $0x38] ss:$28 sps:$4 sm:$0xff]   ;;  %v777_v28 = vld [vmem:[#allocation5 + $0x40] ss:$28 sps:$4 sm:$0xff]  }
  0x2f   :  { %450 = vmatpush1.bf16.msra.mxu1 %v753_v12  ;;  %410 = vmatprep.subr.bf16.mxu0 %v754_v13  ;;  %v780_v30 = vld [vmem:[#allocation5 + $0xc] ss:$28 sps:$4 sm:$0xff]   ;;  %v105_v31 = vld [vmem:[#allocation5 + $0x160] sm:$0x33]  ;;  %v53_v34 = vld [vmem:[#allocation2] sm:$0xff]  ;;  %vm918_vm2 = vmmov 0  }
  0x30   :  { %451 = vmatprep.subr.bf16.mxu1 %v756_v14  ;;  %v782_v32 = vld [vmem:[#allocation5] ss:$28 sps:$4 sm:$0xff]   ;;  %v783_v33 = vld [vmem:[#allocation5 + $0x8] ss:$28 sps:$4 sm:$0xff]   ;;  %v692_v35 = vcombine.high %v105_v31, %v105_v31  ;;  %v691_v36 = vcombine.low %v105_v31, %v105_v31  ;;  %v54_v38 = vpack.c.bf16 %v53_v34, %v53_v34  ;;  %v790_v44 = vld [vmem:[#allocation5 + $0x130] ss:$28 sps:$4 sm:$0xff]  }
  0x31   :  { %v786_v37 = vld [vmem:[#allocation5 + $0x168] ss:$0 sps:$4 sm:$0x33]   ;;  %v793_v45 = vld [vmem:[#allocation5 + $0xf4] ss:$28 sps:$4 sm:$0xff]   ;;  %v110_v61 = vshrl.u32 %v109_v60, 7 }
  0x32   :  { %411 = vmatpush1.bf16.msra.mxu0 %v758_v15  ;;  %v789_v39 = vld [vmem:[#allocation5 + $0x12c] ss:$28 sps:$4 sm:$0xff]   ;;  %v396_v41 = vsel %vm382_vm0, %v691_v36, 0  ;;  %v402_v42 = vsel %vm382_vm0, %v786_v37, 0  ;;  %v794_v47 = vld [vmem:[#allocation5 + $0xf8] ss:$28 sps:$4 sm:$0xff]  }
  0x33   :  { %452 = vmatpush1.bf16.msra.mxu1 %v759_v16  ;;  %412 = vmatprep.subr.bf16.mxu0 %v760_v17  ;;  %v787_v43 = vld [vmem:[#allocation5 + $0x128] ss:$28 sps:$4 sm:$0xff]   ;;  %v791_v46 = vld [vmem:[#allocation5 + $0xf0] ss:$28 sps:$4 sm:$0xff]   ;;  %v797_v48 = vld [vmem:[#allocation5 + $0xbc] ss:$28 sps:$4 sm:$0xff]  }
  0x34   :  { %453 = vmatprep.subr.bf16.mxu1 %v762_v18  ;;  %v795_v49 = vld [vmem:[#allocation5 + $0xb8] ss:$28 sps:$4 sm:$0xff]   ;;  %v798_v50 = vld [vmem:[#allocation5 + $0xc0] ss:$28 sps:$4 sm:$0xff]   ;;  %v802_v53 = vld [vmem:[#allocation5 + $0x88] ss:$28 sps:$4 sm:$0xff]  }
  0x35   :  { %v801_v51 = vld [vmem:[#allocation5 + $0x84] ss:$28 sps:$4 sm:$0xff]   ;;  %v805_v54 = vld [vmem:[#allocation5 + $0x4c] ss:$28 sps:$4 sm:$0xff]   ;;  %v809_v57 = vld [vmem:[#allocation5 + $0x14] ss:$28 sps:$4 sm:$0xff]  }
  0x36   :  { %413 = vmatpush1.bf16.msra.mxu0 %v764_v19  ;;  %v799_v52 = vld [vmem:[#allocation5 + $0x80] ss:$28 sps:$4 sm:$0xff]   ;;  %v803_v55 = vld [vmem:[#allocation5 + $0x48] ss:$28 sps:$4 sm:$0xff]   ;;  %v806_v56 = vld [vmem:[#allocation5 + $0x50] ss:$28 sps:$4 sm:$0xff]  }
  0x37   :  { %454 = vmatpush1.bf16.msra.mxu1 %v765_v20  ;;  %414 = vmatprep.subr.bf16.mxu0 %v766_v21  ;;  %v807_v58 = vld [vmem:[#allocation5 + $0x10] ss:$28 sps:$4 sm:$0xff]   ;;  %v810_v59 = vld [vmem:[#allocation5 + $0x18] ss:$28 sps:$4 sm:$0xff]   ;;  %v111_v62 = vsub.s32 0, %v110_v61  ;;  %v119_v63 = vsub.s32 2, %v110_v61 }
  0x38   :  { %455 = vmatprep.subr.bf16.mxu1 %v768_v22  ;;  %v115_v1 = vsub.s32 1, %v110_v61  ;;  %v123_v2 = vsub.s32 3, %v110_v61  ;;  %v127_v31 = vsub.s32 4, %v110_v61  ;;  %v131_v36 = vsub.s32 5, %v110_v61  ;;  %s919_s0 = smov [#allocation8]  }
  0x39   :  { %s635_s2 = sshll.u32 %s919_s0, 4  ;;  %vm627_vm3 = vcmask 125952   ;;  %s636_s2 = int_to_ptr.vmem [resolvable:$true] %s635_s2 }
  0x3a   :  { %415 = vmatpush1.bf16.msra.mxu0 %v770_v23  ;;  %s885_s29 = scalar_lea.vmem %s636_s2, 448  ;;  %p890_p2 = scmp.lt.s32.totalorder %s636_s2, %s636_s2 }
  0x3b   :  { %456 = vmatpush1.bf16.msra.mxu1 %v771_v24  ;;  %416 = vmatprep.subr.bf16.mxu0 %v772_v25  ;;  %p886_p1 = scmp.ne.s32.totalorder %s636_s2, %s885_s29  ;;  %p891_p3 = scmp.lt.s32.totalorder %s885_s29, %s885_s29 }
  0x3c   :  { %457 = vmatprep.subr.bf16.mxu1 %v774_v26 }
  0x3d   :  { %p892_p4 = por %p891_p3, %p890_p2 }
  0x3e   :  { %417 = vmatpush1.bf16.msra.mxu0 %v776_v27 }
  0x3f   :  { %458 = vmatpush1.bf16.msra.mxu1 %v777_v28  ;;  %418 = vmatprep.subr.bf16.mxu0 %v778_v29  ;;  %p893_p5 = pnand %p892_p4, %p886_p1 }
  0x40   :  { %459 = vmatprep.subr.bf16.mxu1 %v780_v30 }
  0x42   :  { %419 = vmatpush1.bf16.msra.mxu0 %v782_v32  ;;  %v135_v32 = vsub.s32 6, %v110_v61 }
  0x43   :  { %460 = vmatpush1.bf16.msra.mxu1 %v783_v33  ;;  %698 = vmatprep.subr.msk.bf16.mxu0 %vm382_vm0, %v692_v35 }
  0x44   :  { %717 = vmatprep.subr.bf16.mxu1 %v917_v40 }
  0x45   :  { %695 = vmatmul.mubr.msk.bf16.vlgmr.msra.gmra.mxu0 %vm378_vm1, %v54_v38 }
  0x46   :  { %697 = vmatmul.mubr.msk.bf16.vlgmr.msra.gmra.mxu1 %vm378_vm1, %v54_v38  ;;  %489 = vmatpush1.bf16.msra.mxu0 %v396_v41 }
  0x47   :  { %718 = vmatpush3.bf16.msra.mxu1 %v402_v42  ;;  %490 = vmatprep.subr.bf16.mxu0 %v789_v39 }
  0x48   :  { %719 = vmatprep.subr.bf16.mxu1 %v917_v40  ;;  %518 = vmatprep.mubr.bf16.mxu0 %v916_v0  ;;  %v107_v0 = vld [vmem:[#allocation7] sm:$0x7f] }
  0x49   :  { %731 = vmatprep.mubr.msk.bf16.mxu1 %vm918_vm2, %v917_v40  ;;  %v112_v3 = vrot.slane %v107_v0, %v111_v62  ;;  %v120_v4 = vrot.slane %v107_v0, %v119_v63  ;;  %v116_v5 = vrot.slane %v107_v0, %v115_v1  ;;  %v124_v6 = vrot.slane %v107_v0, %v123_v2 }
  0x4a   :  { %491 = vmatpush1.bf16.msra.mxu0 %v787_v43  ;;  %v128_v39 = vrot.slane %v107_v0, %v127_v31  ;;  %v132_v42 = vrot.slane %v107_v0, %v131_v36 }
  0x4b   :  { %720 = vmatpush3.bf16.msra.mxu1 %v790_v44  ;;  %492 = vmatprep.subr.bf16.mxu0 %v793_v45 }
  0x4c   :  { %721 = vmatprep.subr.bf16.mxu1 %v917_v40 }
  0x4e   :  { %493 = vmatpush1.bf16.msra.mxu0 %v791_v46 }
  0x4f   :  { %722 = vmatpush3.bf16.msra.mxu1 %v794_v47  ;;  %494 = vmatprep.subr.bf16.mxu0 %v797_v48 }
  0x50   :  { %723 = vmatprep.subr.bf16.mxu1 %v917_v40 }
  0x52   :  { %495 = vmatpush1.bf16.msra.mxu0 %v795_v49 }
  0x53   :  { %724 = vmatpush3.bf16.msra.mxu1 %v798_v50  ;;  %496 = vmatprep.subr.bf16.mxu0 %v801_v51 }
  0x54   :  { %725 = vmatprep.subr.bf16.mxu1 %v917_v40 }
  0x56   :  { %497 = vmatpush1.bf16.msra.mxu0 %v799_v52 }
  0x57   :  { %726 = vmatpush3.bf16.msra.mxu1 %v802_v53  ;;  %498 = vmatprep.subr.bf16.mxu0 %v805_v54 }
  0x58   :  { %727 = vmatprep.subr.bf16.mxu1 %v917_v40 }
  0x5a   :  { %499 = vmatpush1.bf16.msra.mxu0 %v803_v55 }
  0x5b   :  { %728 = vmatpush3.bf16.msra.mxu1 %v806_v56  ;;  %500 = vmatprep.subr.bf16.mxu0 %v809_v57 }
  0x5c   :  { %729 = vmatprep.subr.bf16.mxu1 %v917_v40  ;;  %v136_v40 = vrot.slane %v107_v0, %v135_v32 }
  0x5e   :  { %501 = vmatpush1.bf16.msra.mxu0 %v807_v58 }
  0x5f   :  { %730 = vmatpush3.bf16.msra.mxu1 %v810_v59 }
  0x61   :  { %699 = vmatmul.mubr.msk.bf16.vlgmr.msra.gmra.mxu0 %vm378_vm1, %v54_v38 }
  0x62   :  { %732 = vmatmul.mubr.msk.bf16.vlgmr.msra.gmra.mxu1 %vm378_vm1, %v54_v38 }
 0x105   :  { %v438_v7 = vpop.f32.mrf.mxu0 }
 0x106   :  { %v479_v8 = vpop.f32.mrf.mxu1  ;;  %v439_v9 = vadd.f32 %v438_v7, %v112_v3 }
 0x107   :  { %v480_v10 = vadd.f32 %v479_v8, %v120_v4  ;;  %v440_v11 = vpop.f32.mrf.mxu0 }
 0x108   :  { %v481_v12 = vpop.f32.mrf.mxu1  ;;  %v567_v13 = vmul.f32 0.5, %v439_v9  ;;  %v441_v15 = vadd.f32 %v440_v11, %v116_v5 }
 0x109   :  { %v569_v14 = vmul.f32 0.5, %v480_v10  ;;  %v482_v16 = vadd.f32 %v481_v12, %v124_v6  ;;  %v442_v17 = vpop.f32.mrf.mxu0 }
 0x10a   :  { %v483_v18 = vpop.f32.mrf.mxu1  ;;  %811 = vtanh.f32 %v567_v13  ;;  %v568_v19 = vmul.f32 0.5, %v441_v15 }
 0x10b   :  { %v570_v20 = vmul.f32 0.5, %v482_v16  ;;  %813 = vtanh.f32 %v569_v14  ;;  %v443_v21 = vpop.f32.mrf.mxu0 }
 0x10c   :  { %v484_v22 = vpop.f32.mrf.mxu1  ;;  %815 = vtanh.f32 %v568_v19 }
 0x10d   :  { %817 = vtanh.f32 %v570_v20 }
 0x117   :  { %v812_v23 = vpop.eup %811 }
 0x118   :  { %v814_v24 = vpop.eup %813  ;;  %v581_v25 = vmul.f32 0.5, %v812_v23 }
 0x119   :  { %v816_v26 = vpop.eup %815  ;;  %v583_v27 = vmul.f32 0.5, %v814_v24 }
 0x11a   :  { %v818_v28 = vpop.eup %817  ;;  %v588_v29 = vadd.f32 0.5, %v581_v25  ;;  %v582_v30 = vmul.f32 0.5, %v816_v26 }
 0x11b   :  { %v590_v33 = vadd.f32 0.5, %v583_v27  ;;  %v584_v34 = vmul.f32 0.5, %v818_v28 }
 0x11c   :  { %v589_v35 = vadd.f32 0.5, %v582_v30 }
 0x11d   :  { %v591_v37 = vadd.f32 0.5, %v584_v34 }
 0x11e   :  { %v705_v38 = vpack.c.bf16 %v589_v35, %v588_v29 }
 0x11f   :  { %v706_v41 = vpack.c.bf16 %v591_v37, %v590_v33 }
 0x120   :  { %624 = vst [vmem:[#allocation8] sm:$0xff] %v705_v38 }
 0x121   :  { %625 = vst [vmem:[#allocation8 + $0x8] sm:$0xff] %v706_v41  ;;  %v520_v43 = vpop.f32.mrf.mxu0 }
 0x122   :  { %v561_v44 = vpop.f32.mrf.mxu1  ;;  %v521_v45 = vadd.f32 %v520_v43, %v128_v39 }
 0x123   :  { %v562_v46 = vadd.f32 %v561_v44, %v136_v40  ;;  %v522_v47 = vpop.f32.mrf.mxu0 }
 0x124   :  { %v733_v48 = vpop.f32.mrf.mxu1  ;;  %v571_v49 = vmul.f32 0.5, %v521_v45  ;;  %v523_v51 = vadd.f32 %v522_v47, %v132_v42 }
 0x125   :  { %v573_v50 = vmul.f32 0.5, %v562_v46  ;;  %v524_v52 = vpop.f32.mrf.mxu0 }
 0x126   :  { %v564_v53 = vpop.f32.mrf.mxu1  ;;  %819 = vtanh.f32 %v571_v49  ;;  %v572_v54 = vmul.f32 0.5, %v523_v51 }
 0x127   :  { %821 = vtanh.f32 %v573_v50  ;;  %v525_v55 = vpop.f32.mrf.mxu0 }
 0x128   :  { %v734_v56 = vpop.f32.mrf.mxu1  ;;  %823 = vtanh.f32 %v572_v54 }
 0x133   :  { %v820_v57 = vpop.eup %819 }
 0x134   :  { %v822_v58 = vpop.eup %821  ;;  %v585_v59 = vmul.f32 0.5, %v820_v57 }
 0x135   :  { %v824_v60 = vpop.eup %823  ;;  %v587_v61 = vmul.f32 0.5, %v822_v58 }
 0x136   :  { %v586_v62 = vmul.f32 0.5, %v824_v60  ;;  %v592_v0 = vadd.f32 0.5, %v585_v59 }
 0x137   :  { %v594_v63 = vadd.f32 0.5, %v587_v61 }
 0x138   :  { %v593_v1 = vadd.f32 0.5, %v586_v62 }
 0x139   :  { %v708_v2 = vpack.c.bf16 %v594_v63, %v594_v63 }
 0x13a   :  { %v707_v3 = vpack.c.bf16 %v593_v1, %v592_v0 }
 0x13b   :  { %628 = vst.msk [vmem:[#allocation8 + $0x18] sm:$0xf] %vm627_vm3, %v708_v2 }
 0x13c   :  { %626 = vst [vmem:[#allocation8 + $0x10] sm:$0xff] %v707_v3 }
 0x13d   :  { %896 = shalt.err (!%p893_p5)
}
 0x13e   :  { %638 = dma.vmem_to_hbm [thread:$0]  %s636_s2, 448, %s969_s3, [#allocation4]  }
 0x13f   :  { %909 = dma.done.wait [#allocation4], 448  }
 0x140   :  { %910 = vsyncadd [#allocation4], 4294966848 }
 0x141   :  { %642 = vsyncpa [#allocation3], 1 }
 0x142   :  { %643 = vsyncpa [#allocation6], 1 }
 0x143   :  { %644 = vsyncpa [#allocation4], 1 }

</bundles_post_ra>
